<compile_context>
chip_gen: v5e
topology: v5e:2x2
jax: 0.10.0
libtpu: 0.0.40
codegen_flags: <defaults>
</compile_context>

<pallas_src>
import functools

import jax
import jax.numpy as jnp
from jax.experimental import pallas as pl
from jax.experimental.pallas import tpu as pltpu


_LANE = 128      # TPU lane width (last dim)
_ROW_ALIGN = 16  # bf16 packs 16 rows per vreg -> keep row tiles 16-aligned
_HIDDEN = 50     # hidden width of the PyTorch module


def _round_up(n, m):
    return ((n + m - 1) // m) * m


# ----------------------------------------------------------------------------
# Gradient reversal layer: identity forward, negated gradient backward.
# ----------------------------------------------------------------------------
@jax.custom_vjp
def gradient_reversal(x):
    return x


def _grl_fwd(x):
    return x, None


def _grl_bwd(_, g):
    return (-g,)


gradient_reversal.defvjp(_grl_fwd, _grl_bwd)


# ----------------------------------------------------------------------------
# Pallas kernel: one (TM, F) row tile of the two-layer MLP head.
# ----------------------------------------------------------------------------
def _head_kernel(x_ref, w1_ref, b1_ref, w2_ref, b2_ref, o_ref, *, d):
    # x:  [TM, F]   f32 (streamed over batch; cast to bf16 here for the MXU)
    # w1: [F, Hp]   bf16 (hidden zero-padded 50 -> 128, VMEM-resident)
    # b1: [1, Hp]   f32
    # w2: [Hp, Dp]  bf16 (zero-padded hidden rows / domain cols, resident)
    # b2: [1, D]    f32
    # o:  [TM, D]   f32 (only the real domain columns are written back)
    x = x_ref[...].astype(jnp.bfloat16)
    h = jnp.dot(x, w1_ref[...], preferred_element_type=jnp.float32)
    h = jnp.maximum(h + b1_ref[...], 0.0)
    # Dropout: identity in eval mode.
    out = jnp.dot(h.astype(jnp.bfloat16), w2_ref[...],
                  preferred_element_type=jnp.float32)
    o_ref[...] = out[:, :d] + b2_ref[...]


# ----------------------------------------------------------------------------
# One-time weight preparation (hoisted out of the per-call hot path).
# ----------------------------------------------------------------------------
def prepare_params(params):
    w1 = jnp.asarray(params["w1"])
    b1 = jnp.asarray(params["b1"])
    w2 = jnp.asarray(params["w2"])
    b2 = jnp.asarray(params["b2"])
    f, h = w1.shape
    h2, d = w2.shape
    assert h == h2
    hp = _round_up(h, _LANE)
    dp = _round_up(d, _LANE)
    return {
        "w1_p": jnp.pad(w1, ((0, 0), (0, hp - h))).astype(jnp.bfloat16),
        "b1_p": jnp.pad(b1, (0, hp - h)).reshape(1, hp).astype(jnp.float32),
        "w2_p": jnp.pad(w2, ((0, hp - h), (0, dp - d))).astype(jnp.bfloat16),
        "b2_p": b2.reshape(1, d).astype(jnp.float32),
        "dims": (f, h, d, hp, dp),
    }


def _choose_tile(B, F, D, Hp, Dp, block_rows):
    # Resident weight/bias footprint (default pipeline double-buffers them).
    w_bytes = 2 * (F * Hp * 2 + Hp * Dp * 2 + Hp * 4 + D * 4)
    # Per-row streamed bytes, double-buffered: f32 x in + f32 out.
    row_bytes = 2 * (F * 4 + D * 4)
    budget = 24 * 2**20                # stay well inside v7x's 64 MiB VMEM
    avail = max(budget - w_bytes, _ROW_ALIGN * row_bytes)
    max_rows_vmem = max(_ROW_ALIGN,
                        (avail // row_bytes) // _ROW_ALIGN * _ROW_ALIGN)
    # Keep >= 4 grid steps so the "parallel" batch axis can be sharded across
    # v7x's two TensorCores.
    max_rows_steps = _round_up(pl.cdiv(B, 4), _ROW_ALIGN)
    tm = max(_ROW_ALIGN,
             min(_round_up(block_rows, _ROW_ALIGN), max_rows_steps,
                 max_rows_vmem))
    need = w_bytes + tm * row_bytes
    vmem_limit = int(min(max(2 * need, 8 * 2**20), 40 * 2**20))
    return tm, vmem_limit


# ----------------------------------------------------------------------------
# Wrapper reproducing DomainAdversarialHead.forward (eval mode).
# ----------------------------------------------------------------------------
def domain_adversarial_head(features, params, proposals=None, labels=None, *,
                            block_rows=2048, use_pallas=None, prepared=None):
    """features: [B, F] or [B, F, 1, 1]; params: w1[F,50], b1[50], w2[50,D], b2[D].

    Returns (predictions [B, D], {}).
    """
    del proposals, labels
    if features.ndim == 4:
        assert features.shape[2] == 1 and features.shape[3] == 1
    x = gradient_reversal(features).reshape(features.shape[0], -1)

    w1, b1, w2, b2 = params["w1"], params["b1"], params["w2"], params["b2"]
    B, F = x.shape
    D = w2.shape[1]

    if use_pallas is None:
        # Tiny batches: pallas_call fixed overhead dominates; let XLA fuse it.
        use_pallas = B >= 64
    if not use_pallas:
        # Plain-jnp f32 path: also the differentiable path (gradient reversal
        # custom_vjp applies; use this for training).
        h = jnp.maximum(x @ w1 + b1[None, :], 0.0)
        predictions = h @ w2 + b2[None, :]
        return predictions, {}

    if prepared is None:
        prepared = prepare_params(params)
    f_chk, _, D, Hp, Dp = prepared["dims"]
    assert f_chk == F

    tm, vmem_limit = _choose_tile(B, F, D, Hp, Dp, block_rows)

    out = pl.pallas_call(
        functools.partial(_head_kernel, d=D),
        out_shape=jax.ShapeDtypeStruct((B, D), jnp.float32),
        grid=(pl.cdiv(B, tm),),
        in_specs=[
            pl.BlockSpec((tm, F), lambda i: (i, 0)),    # x streams over batch
            pl.BlockSpec((F, Hp), lambda i: (0, 0)),    # weights stay resident
            pl.BlockSpec((1, Hp), lambda i: (0, 0)),
            pl.BlockSpec((Hp, Dp), lambda i: (0, 0)),
            pl.BlockSpec((1, D), lambda i: (0, 0)),
        ],
        out_specs=pl.BlockSpec((tm, D), lambda i: (i, 0)),
        compiler_params=pltpu.CompilerParams(
            dimension_semantics=("parallel",),
            vmem_limit_bytes=vmem_limit,
        ),
    )(x, prepared["w1_p"], prepared["b1_p"], prepared["w2_p"],
      prepared["b2_p"])

    # TODO(synk): training-mode Dropout, cross_entropy(predictions, cat(labels))
    # domain loss, and a custom VJP for this Pallas path are not implemented;
    # use the jnp fallback (use_pallas=False) for training/grad.
    return out, {}


def init_params(key, in_features, domains, hidden=_HIDDEN):
    """Deterministic synthetic init matching nn.Linear shapes (transposed)."""
    k1, k2, k3, k4 = jax.random.split(key, 4)
    bound1 = 1.0 / jnp.sqrt(in_features)
    bound2 = 1.0 / jnp.sqrt(hidden)
    return {
        "w1": jax.random.uniform(k1, (in_features, hidden), jnp.float32,
                                 -bound1, bound1),
        "b1": jax.random.uniform(k2, (hidden,), jnp.float32, -bound1, bound1),
        "w2": jax.random.uniform(k3, (hidden, domains), jnp.float32,
                                 -bound2, bound2),
        "b2": jax.random.uniform(k4, (domains,), jnp.float32, -bound2, bound2),
    }


if __name__ == "__main__":
    key = jax.random.PRNGKey(0)
    k_feat, k_param, k_small = jax.random.split(key, 3)

    batch = 200          # deliberately NOT a multiple of the row tile
    in_features = 96
    domains = 4

    # Features as pooled backbone output: [B, C, 1, 1]
    features = jax.random.normal(k_feat, (batch, in_features, 1, 1),
                                 dtype=jnp.float32)
    params = init_params(k_param, in_features, domains)
    prepared = prepare_params(params)    # one-time weight pad/cast, hoisted

    preds, loss_dict = domain_adversarial_head(features, params,
                                               prepared=prepared,
                                               use_pallas=True)
    preds = jax.block_until_ready(preds)
    assert preds.shape == (batch, domains)
    assert loss_dict == {}

    # Reference applying the same bf16 roundings the kernel applies.
    x = features.reshape(batch, -1)
    xb = x.astype(jnp.bfloat16).astype(jnp.float32)
    w1b = params["w1"].astype(jnp.bfloat16).astype(jnp.float32)
    w2b = params["w2"].astype(jnp.bfloat16).astype(jnp.float32)
    h = jnp.maximum(xb @ w1b + params["b1"][None, :], 0.0)
    hb = h.astype(jnp.bfloat16).astype(jnp.float32)
    ref = hb @ w2b + params["b2"][None, :]
    assert jnp.allclose(preds, ref, atol=2e-3, rtol=2e-3), \
        float(jnp.max(jnp.abs(preds - ref)))

    # Tiny-batch auto-fallback path (plain jnp, f32, differentiable).
    small_feats = jax.random.normal(k_small, (4, in_features), jnp.float32)
    sp, sl = domain_adversarial_head(small_feats, params)
    sp = jax.block_until_ready(sp)
    hs = jnp.maximum(small_feats @ params["w1"] + params["b1"][None, :], 0.0)
    sref = hs @ params["w2"] + params["b2"][None, :]
    assert sp.shape == (4, domains) and sl == {}
    assert jnp.allclose(sp, sref, atol=1e-5, rtol=1e-5)

    print("KERNEL_OK")
</pallas_src>

<mosaic_0001>
module attributes {stable_mosaic.version = 11 : i64} {
  func.func @_head_kernel(%arg0: i32, %arg1: memref<64x96xf32, #tpu.memory_space<vmem>>, %arg2: memref<96x128xbf16, #tpu.memory_space<vmem>>, %arg3: memref<1x128xf32, #tpu.memory_space<vmem>>, %arg4: memref<128x128xbf16, #tpu.memory_space<vmem>>, %arg5: memref<1x4xf32, #tpu.memory_space<vmem>>, %arg6: memref<64x4xf32, #tpu.memory_space<vmem>>) attributes {dimension_semantics = [#tpu.dimension_semantics<parallel>], iteration_bounds = array<i64: 4>, scalar_prefetch = 0 : i64, scratch_operands = 0 : i64, tpu.core_type = #tpu.core_type<tc>, window_params = [{transform_indices = @transform_0, window_bounds = array<i64: 64, 96>}, {pipeline_mode = #tpu.pipeline_mode<synchronous>, transform_indices = @transform_1, window_bounds = array<i64: 96, 128>}, {pipeline_mode = #tpu.pipeline_mode<synchronous>, transform_indices = @transform_2, window_bounds = array<i64: 1, 128>}, {pipeline_mode = #tpu.pipeline_mode<synchronous>, transform_indices = @transform_3, window_bounds = array<i64: 128, 128>}, {pipeline_mode = #tpu.pipeline_mode<synchronous>, transform_indices = @transform_4, window_bounds = array<i64: 1, 4>}, {transform_indices = @transform_5, window_bounds = array<i64: 64, 4>}]} {
    %c0 = arith.constant 0 : index
    %c0_0 = arith.constant 0 : index
    %0 = vector.load %arg1[%c0, %c0_0] : memref<64x96xf32, #tpu.memory_space<vmem>>, vector<64x96xf32>
    %1 = arith.truncf %0 : vector<64x96xf32> to vector<64x96xbf16>
    %c0_1 = arith.constant 0 : index
    %c0_2 = arith.constant 0 : index
    %2 = vector.load %arg2[%c0_1, %c0_2] : memref<96x128xbf16, #tpu.memory_space<vmem>>, vector<96x128xbf16>
    %cst = arith.constant dense<0.000000e+00> : vector<64x128xf32>
    %3 = tpu.matmul %1, %2, %cst {dimension_numbers = #tpu.dot_dimension_numbers<[1], [0], [0], [1], [0, 0, 1, 1], [], []>} : vector<64x96xbf16>, vector<96x128xbf16>, vector<64x128xf32> -> vector<64x128xf32>
    %c0_3 = arith.constant 0 : index
    %c0_4 = arith.constant 0 : index
    %4 = vector.load %arg3[%c0_3, %c0_4] : memref<1x128xf32, #tpu.memory_space<vmem>>, vector<1x128xf32>
    %5 = vector.broadcast %4 : vector<1x128xf32> to vector<64x128xf32>
    %6 = arith.addf %3, %5 : vector<64x128xf32>
    %cst_5 = arith.constant 0.000000e+00 : f32
    %7 = vector.broadcast %cst_5 : f32 to vector<64x128xf32>
    %8 = arith.maximumf %6, %7 : vector<64x128xf32>
    %9 = arith.truncf %8 : vector<64x128xf32> to vector<64x128xbf16>
    %c0_6 = arith.constant 0 : index
    %c0_7 = arith.constant 0 : index
    %10 = vector.load %arg4[%c0_6, %c0_7] : memref<128x128xbf16, #tpu.memory_space<vmem>>, vector<128x128xbf16>
    %cst_8 = arith.constant dense<0.000000e+00> : vector<64x128xf32>
    %11 = tpu.matmul %9, %10, %cst_8 {dimension_numbers = #tpu.dot_dimension_numbers<[1], [0], [0], [1], [0, 0, 1, 1], [], []>} : vector<64x128xbf16>, vector<128x128xbf16>, vector<64x128xf32> -> vector<64x128xf32>
    %12 = vector.extract_strided_slice %11 {offsets = [0, 0], sizes = [64, 4], strides = [1, 1]} : vector<64x128xf32> to vector<64x4xf32>
    %c0_9 = arith.constant 0 : index
    %c0_10 = arith.constant 0 : index
    %13 = vector.load %arg5[%c0_9, %c0_10] : memref<1x4xf32, #tpu.memory_space<vmem>>, vector<1x4xf32>
    %14 = vector.broadcast %13 : vector<1x4xf32> to vector<64x4xf32>
    %15 = arith.addf %12, %14 : vector<64x4xf32>
    %c0_11 = arith.constant 0 : index
    %c0_12 = arith.constant 0 : index
    %16 = vector.load %arg6[%c0_11, %c0_12] : memref<64x4xf32, #tpu.memory_space<vmem>>, vector<64x4xf32>
    tpu.vector_store %arg6[%c0_11, %c0_12], %15 {strides = array<i32>} : memref<64x4xf32, #tpu.memory_space<vmem>>, vector<64x4xf32>,
    return
  }
  func.func @transform_0(%arg0: i32) -> (i32, i32) {
    %c0_i32 = arith.constant 0 : i32
    %c0_i32_0 = arith.constant 0 : i32
    return %arg0, %c0_i32 : i32, i32
  }
  func.func @transform_1(%arg0: i32) -> (i32, i32) {
    %c0_i32 = arith.constant 0 : i32
    %c0_i32_0 = arith.constant 0 : i32
    %c0_i32_1 = arith.constant 0 : i32
    return %c0_i32, %c0_i32_0 : i32, i32
  }
  func.func @transform_2(%arg0: i32) -> (i32, i32) {
    %c0_i32 = arith.constant 0 : i32
    %c0_i32_0 = arith.constant 0 : i32
    %c0_i32_1 = arith.constant 0 : i32
    return %c0_i32, %c0_i32_0 : i32, i32
  }
  func.func @transform_3(%arg0: i32) -> (i32, i32) {
    %c0_i32 = arith.constant 0 : i32
    %c0_i32_0 = arith.constant 0 : i32
    %c0_i32_1 = arith.constant 0 : i32
    return %c0_i32, %c0_i32_0 : i32, i32
  }
  func.func @transform_4(%arg0: i32) -> (i32, i32) {
    %c0_i32 = arith.constant 0 : i32
    %c0_i32_0 = arith.constant 0 : i32
    %c0_i32_1 = arith.constant 0 : i32
    return %c0_i32, %c0_i32_0 : i32, i32
  }
  func.func @transform_5(%arg0: i32) -> (i32, i32) {
    %c0_i32 = arith.constant 0 : i32
    %c0_i32_0 = arith.constant 0 : i32
    return %arg0, %c0_i32 : i32, i32
  }
}

</mosaic_0001>

<bundles_post_ra>
// kernel: tpu_custom_call.1
= control target key start
LH: loop header
LB: loop body
LE: loop exit
PB: predicated region body
PF: predicated region fallthrough
CT: control target
= control target key end

     0   :  { %s1046_s18 = smov 0   ;;  %s1048_s19 = smov 0   ;;  %s1225_s0 = inlined_call_operand.vmem [shape: f32[200,96], index: 0, kind: input, shape index: {}]   ;;  %s1226_s1 = inlined_call_operand.vmem [shape: bf16[96,128], index: 1, kind: input, shape index: {}]   ;;  %s1227_s2 = inlined_call_operand.vmem [shape: f32[1,128], index: 2, kind: input, shape index: {}]   ;;  %s1228_s3 = inlined_call_operand.vmem [shape: bf16[128,128], index: 3, kind: input, shape index: {}]   ;;  %s1229_s4 = inlined_call_operand.vmem [shape: f32[1,4], index: 4, kind: input, shape index: {}]   ;;  %s1230_s5 = inlined_call_operand.vmem [shape: f32[200,4], index: 5, kind: output, shape index: {}]  }
   0x1   :  { %s1050_s20 = smov 0  }
   0x2 LB: > { %s1059_s21 = sadd.s32 4294967295, %s982_s20   ;;  %s1061_s22 = sadd.s32 1, %s982_s20   ;;  %s982_s20 = sphi %s1050_s20, %s1238_s20   ;;  %s978_s19 = sphi %s1048_s19, %s1237_s19   ;;  %s974_s18 = sphi %s1046_s18, %s1236_s18  }
   0x3   : > { %s129_s23 = ssub.s32 %s982_s20, %s1061_s22  ;;  %s132_s24 = sadd.s32 1, %s978_s19 }
   0x4   : > { %p130_p0 = scmp.eq.s32.totalorder %s129_s23, 0  ;;  %p142_p1 = scmp.ne.s32.totalorder %s978_s19, %s974_s18 }
   0x5   : > { %p143_p2 = scmp.eq.s32.totalorder %s1059_s21, 3  ;;  %p726_p3 = scmp.ge.s32.totalorder %s982_s20, 1 }
   0x6   : > { %s1069_s25 = scalar_select %p130_p0, %s978_s19, %s132_s24  }
   0x7   : > { %p1071_p4 = por %p143_p2, %p142_p1  ;;  %p196_p5 = scmp.lt.s32.totalorder %s982_s20, 5 }
   0x9   : > { %p197_p6 = pnand %p726_p3, %p196_p5 }
   0xa   : > { %s1079_s29 = sshll.u32 (!%p197_p6), %s1059_s21, 3  ;;  %s224_s24 = sand.u32 (!%p197_p6), 1, %s974_s18  }
   0xb   : > { %200 = sbr.rel (%p197_p6) target bundleno = 403 (0x193), region = 40  ;;  %p232_p7 = scmp.lt.s32.totalorder (!%p197_p6), %s1079_s29, 24 }
   0xc   : > { %s727_s27 = sshll.u32 (!%p197_p6), %s224_s24, 6 }
   0xd   : > { %s1146_s6 = scalar_lea.vmem (!%p197_p6), [#allocation2], %s727_s27  }
  0x10   : > { %v812_v0 = vld [vmem:[%s1226_s1 + $0x28] sm:$0xff]  ;;  %v811_v1 = vld [vmem:[%s1226_s1 + $0x20] sm:$0xff]  ;;  %v810_v2 = vld [vmem:[%s1226_s1 + $0x18] sm:$0xff]  ;;  %s233_s9 = scalar_select %p232_p7, %s1079_s29, 24  ;;  %vm311_vm0 = vcmask 785408   ;;  %vm470_vm1 = vcmask 31744  }
  0x11   : > { %326 = vmatpush.bf16.msra.mxu0 %v812_v0  ;;  %824 = vmatpush.bf16.msra.mxu3 %v812_v0  ;;  %v809_v3 = vld [vmem:[%s1226_s1 + $0x10] sm:$0xff]  ;;  %v808_v4 = vld [vmem:[%s1226_s1 + $0x8] sm:$0xff]  ;;  %v807_v5 = vld [vmem:[%s1226_s1] sm:$0xff]  ;;  %s487_s18 = ssub.s32 (%p1071_p4), 25, %s1079_s29  ;;  %s821_s7 = sshll.u32 (%p1071_p4), %s1059_s21, 6 }
  0x12   : > { %s729_s12 = sshll.u32 %s233_s9, 3  ;;  %v820_v12 = vld [vmem:[%s1228_s3 + $0x38] sm:$0xff]  ;;  %v819_v13 = vld [vmem:[%s1228_s3 + $0x30] sm:$0xff]  ;;  %v818_v14 = vld [vmem:[%s1228_s3 + $0x28] sm:$0xff]  ;;  %p488_p8 = scmp.lt.s32.totalorder (%p1071_p4), %s487_s18, 8 }
  0x13   : > { %s1098_s17 = scalar_lea.vmem %s1225_s0, %s729_s12  ;;  %429 = vmatpush.bf16.msra.mxu1 %v820_v12  ;;  %830 = vmatpush.bf16.msra.mxu2 %v820_v12  ;;  %v817_v17 = vld [vmem:[%s1228_s3 + $0x20] sm:$0xff]  ;;  %v816_v22 = vld [vmem:[%s1228_s3 + $0x18] sm:$0xff]  ;;  %v815_v23 = vld [vmem:[%s1228_s3 + $0x10] sm:$0xff]  ;;  %s1171_s10 = scalar_lea.vmem (%p1071_p4), %s1230_s5, %s821_s7  }
  0x14   : > { %v247_v6 = vld [vmem:[%s1098_s17] sm:$0xff]  ;;  %v248_v7 = vld [vmem:[%s1098_s17 + $0x8] sm:$0xff]  ;;  %v249_v8 = vld [vmem:[%s1098_s17 + $0x10] sm:$0xff] }
  0x15   : > { %327 = vmatpush.bf16.msra.mxu0 %v811_v1  ;;  %825 = vmatpush.bf16.msra.mxu3 %v811_v1  ;;  %v250_v9 = vld [vmem:[%s1098_s17 + $0x18] sm:$0xff]  ;;  %v255_v10 = vpack.c.bf16 %v248_v7, %v247_v6  ;;  %v251_v15 = vld [vmem:[%s1098_s17 + $0x20] sm:$0xff]  ;;  %v252_v16 = vld [vmem:[%s1098_s17 + $0x28] sm:$0xff] }
  0x16   : > { %v256_v11 = vpack.c.bf16 %v250_v9, %v249_v8  ;;  %v257_v18 = vpack.c.bf16 %v252_v16, %v251_v15  ;;  %v253_v19 = vld [vmem:[%s1098_s17 + $0x30] sm:$0xff]  ;;  %v254_v20 = vld [vmem:[%s1098_s17 + $0x38] sm:$0xff]  ;;  %v814_v24 = vld [vmem:[%s1228_s3 + $0x8] sm:$0xff] }
  0x17   : > { %430 = vmatpush.bf16.msra.mxu1 %v819_v13  ;;  %831 = vmatpush.bf16.msra.mxu2 %v819_v13  ;;  %v258_v21 = vpack.c.bf16 %v254_v20, %v253_v19  ;;  %v813_v25 = vld [vmem:[%s1228_s3] sm:$0xff] }
  0x18   : > { %v926_v27 = vld [vmem:[%s1227_s2] ss:$0 sm:$0xff] }
  0x19   : > { %328 = vmatpush.bf16.msra.mxu0 %v810_v2  ;;  %826 = vmatpush.bf16.msra.mxu3 %v810_v2  ;;  %v927_v55 = vld [vmem:[%s1229_s4] ss:$0 sm:$0xff] }
  0x1b   : > { %431 = vmatpush.bf16.msra.mxu1 %v818_v14  ;;  %832 = vmatpush.bf16.msra.mxu2 %v818_v14 }
  0x1d   : > { %329 = vmatpush.bf16.msra.mxu0 %v809_v3  ;;  %827 = vmatpush.bf16.msra.mxu3 %v809_v3 }
  0x1f   : > { %432 = vmatpush.bf16.msra.mxu1 %v817_v17  ;;  %833 = vmatpush.bf16.msra.mxu2 %v817_v17 }
  0x21   : > { %330 = vmatpush.bf16.msra.mxu0 %v808_v4  ;;  %828 = vmatpush.bf16.msra.mxu3 %v808_v4 }
  0x23   : > { %433 = vmatpush.bf16.msra.mxu1 %v816_v22  ;;  %834 = vmatpush.bf16.msra.mxu2 %v816_v22 }
  0x25   : > { %331 = vmatpush.bf16.msra.mxu0 %v807_v5  ;;  %829 = vmatpush.bf16.msra.mxu3 %v807_v5 }
  0x27   : > { %434 = vmatpush.bf16.msra.mxu1 %v815_v23  ;;  %835 = vmatpush.bf16.msra.mxu2 %v815_v23 }
  0x28   : > { %754 = vmatmul.msk.bf16.vlgmr.msra.gmra.mxu0 %vm311_vm0, %v255_v10  ;;  %755 = vmatmul.msk.bf16.vlgmr.msra.gmra.mxu3 %vm311_vm0, %v256_v11 }
  0x2b   : > { %435 = vmatpush.bf16.msra.mxu1 %v814_v24  ;;  %836 = vmatpush.bf16.msra.mxu2 %v814_v24 }
  0x2f   : > { %436 = vmatpush.bf16.msra.mxu1 %v813_v25  ;;  %837 = vmatpush.bf16.msra.mxu2 %v813_v25 }
  0x38   : > { %756 = vmatmul.msk.bf16.gmra.mxu3 %vm311_vm0, %v257_v18 }
  0x48   : > { %757 = vmatmul.msk.bf16.gmra.mxu3 %vm311_vm0, %v258_v21 }
  0xa5   : > { %v333_v26 = vpop.f32.mrf.mxu0 }
  0xa6   : > { %v334_v28 = vadd.f32 %v926_v27, %v333_v26 }
  0xa8   : > { %v353_v31 = vmax.f32 %v334_v28, 0.0 }
  0xab   : > { %v338_v29 = vpop.f32.mrf.mxu3 }
  0xac   : > { %v339_v38 = vadd.f32 %v926_v27, %v338_v29 }
  0xad   : > { %v335_v30 = vpop.f32.mrf.mxu0 }
  0xae   : > { %v336_v32 = vadd.f32 %v926_v27, %v335_v30  ;;  %v355_v40 = vmax.f32 %v339_v38, 0.0 }
  0xb0   : > { %v354_v33 = vmax.f32 %v336_v32, 0.0 }
  0xb2   : > { %v361_v34 = vpack.c.bf16 %v354_v33, %v353_v31 }
  0xb3   : > { %v340_v35 = vpop.f32.mrf.mxu3 }
  0xb4   : > { %437 = vmatmul.bf16.vlgmr.msra.gmra.mxu1 %v361_v34  ;;  %v341_v36 = vadd.f32 %v926_v27, %v340_v35 }
  0xb6   : > { %v356_v39 = vmax.f32 %v341_v36, 0.0 }
  0xb8   : > { %v362_v42 = vpack.c.bf16 %v356_v39, %v355_v40 }
  0xbb   : > { %v343_v37 = vpop.f32.mrf.mxu3 }
  0xbc   : > { %v344_v41 = vadd.f32 %v926_v27, %v343_v37 }
  0xbe   : > { %v357_v45 = vmax.f32 %v344_v41, 0.0 }
  0xc3   : > { %v345_v43 = vpop.f32.mrf.mxu3 }
  0xc4   : > { %v346_v44 = vadd.f32 %v926_v27, %v345_v43  ;;  %442 = vmatmul.bf16.gmra.mxu1 %v362_v42 }
  0xc6   : > { %v358_v46 = vmax.f32 %v346_v44, 0.0 }
  0xc8   : > { %v363_v47 = vpack.c.bf16 %v358_v46, %v357_v45 }
  0xca   : > { %447 = vmatmul.bf16.vlgmr.msra.gmra.mxu2 %v363_v47 }
  0xcb   : > { %v348_v48 = vpop.f32.mrf.mxu3 }
  0xcc   : > { %v349_v49 = vadd.f32 %v926_v27, %v348_v48 }
  0xce   : > { %v359_v52 = vmax.f32 %v349_v49, 0.0 }
  0xd3   : > { %v350_v50 = vpop.f32.mrf.mxu3 }
  0xd4   : > { %v351_v51 = vadd.f32 %v926_v27, %v350_v50 }
  0xd6   : > { %v360_v53 = vmax.f32 %v351_v51, 0.0 }
  0xd8   : > { %v364_v54 = vpack.c.bf16 %v360_v53, %v359_v52 }
  0xda   : > { %452 = vmatmul.bf16.gmra.mxu2 %v364_v54 }
 0x131   : > { %v438_v56 = vpop.f32.mrf.mxu1 }
 0x132   : > { %v462_v57 = vadd.f32 %v927_v55, %v438_v56 }
 0x134   : > { %471 = vst.msk [vmem:[%s1146_s6] sm:$0xff] %vm470_vm1, %v462_v57 }
 0x139   : > { %v440_v58 = vpop.f32.mrf.mxu1 }
 0x13a   : > { %v463_v59 = vadd.f32 %v927_v55, %v440_v58 }
 0x13c   : > { %472 = vst.msk [vmem:[%s1146_s6 + $0x8] sm:$0xff] %vm470_vm1, %v463_v59 }
 0x141   : > { %v443_v60 = vpop.f32.mrf.mxu1 }
 0x142   : > { %v464_v61 = vadd.f32 %v927_v55, %v443_v60 }
 0x144   : > { %473 = vst.msk [vmem:[%s1146_s6 + $0x10] sm:$0xff] %vm470_vm1, %v464_v61 }
 0x149   : > { %v445_v62 = vpop.f32.mrf.mxu1 }
 0x14a   : > { %v465_v63 = vadd.f32 %v927_v55, %v445_v62 }
 0x14c   : > { %474 = vst.msk [vmem:[%s1146_s6 + $0x18] sm:$0xff] %vm470_vm1, %v465_v63 }
 0x14d   : > { %v448_v0 = vpop.f32.mrf.mxu2 }
 0x14e   : > { %v466_v1 = vadd.f32 %v927_v55, %v448_v0 }
 0x150   : > { %475 = vst.msk [vmem:[%s1146_s6 + $0x20] sm:$0xff] %vm470_vm1, %v466_v1 }
 0x155   : > { %v450_v2 = vpop.f32.mrf.mxu2 }
 0x156   : > { %v467_v3 = vadd.f32 %v927_v55, %v450_v2 }
 0x158   : > { %476 = vst.msk [vmem:[%s1146_s6 + $0x28] sm:$0xff] %vm470_vm1, %v467_v3 }
 0x15d   : > { %v453_v4 = vpop.f32.mrf.mxu2 }
 0x15e   : > { %v468_v5 = vadd.f32 %v927_v55, %v453_v4 }
 0x160   : > { %477 = vst.msk [vmem:[%s1146_s6 + $0x30] sm:$0xff] %vm470_vm1, %v468_v5 }
 0x164   : > { %485 = sbr.rel (!%p1071_p4) target bundleno = 403 (0x193), region = 44 }
 0x165   : > { %v455_v6 = vpop.f32.mrf.mxu2 }
 0x166   : > { %v469_v7 = vadd.f32 %v927_v55, %v455_v6 }
 0x168   : > { %478 = vst.msk [vmem:[%s1146_s6 + $0x38] sm:$0xff] %vm470_vm1, %v469_v7 }
 0x169   : > { %s1240_s18 = smov (!%p488_p8, %s487_s18), 8 }
 0x16a   : > { %s792_s11 = sshll.u32 %s1240_s18, 3 }
 0x16b   : > { %p795_p9 = scmp.eq.s32.totalorder %s792_s11, 0 }
 0x16c   : > { %s1177_s12 = sshrl.u32 (!%p795_p9), %s1240_s18, 3 }
 0x16d   : > { %496 = sbr.rel (%p795_p9) target bundleno = 403 (0x193), region = 48  ;;  %p796_p10 = scmp.le.s32.totalorder (!%p795_p9), %s1177_s12, 0 }
 0x172   : > { %679 = sbr.rel (%p796_p10) target bundleno = 386 (0x182), region = 124  ;;  %s1232_s21 = smov (!%p796_p10), %s1171_s10 }
 0x173   : > { %s1233_s26 = smov (!%p796_p10), %s1146_s6  ;;  %s1186_s29 = smov (!%p796_p10), 0  }
 0x174   : > { %s1188_s13 = smov (!%p796_p10), 0  }
 0x177 LB: >> { %v573_v8 = vld [vmem:[%s990_s26] sm:$0xff]  ;;  %v575_v9 = vld [vmem:[%s990_s26 + $0x8] sm:$0xff]  ;;  %v577_v10 = vld [vmem:[%s990_s26 + $0x10] sm:$0xff]  ;;  %s589_s14 = sadd.s32 1, %s994_s29  ;;  %s567_s13 = sadd.s32 1, %s998_s13   ;;  %s998_s13 = sphi %s1188_s13, %s567_s13   ;;  %s994_s29 = sphi %s1186_s29, %s1235_s29   ;;  %s990_s26 = sphi %s1233_s26, %s594_s26   ;;  %s986_s21 = sphi %s1232_s21, %s1234_s21  }
 0x178   : >> { %574 = vst [vmem:[%s986_s21] sm:$0xff] %v573_v8  ;;  %v579_v11 = vld [vmem:[%s990_s26 + $0x18] sm:$0xff]  ;;  %p590_p11 = scmp.ge.s32.totalorder %s589_s14, %s1177_s12  ;;  %v581_v12 = vld [vmem:[%s990_s26 + $0x20] sm:$0xff]  ;;  %v583_v13 = vld [vmem:[%s990_s26 + $0x28] sm:$0xff]  ;;  %p566_p12 = scmp.ge.s32.totalorder %s567_s13, %s1177_s12 }
 0x179   : >> { %576 = vst [vmem:[%s986_s21 + $0x8] sm:$0xff] %v575_v9  ;;  %v585_v14 = vld [vmem:[%s990_s26 + $0x30] sm:$0xff]  ;;  %v587_v15 = vld [vmem:[%s990_s26 + $0x38] sm:$0xff] }
 0x17a   : >> { %578 = vst [vmem:[%s986_s21 + $0x10] sm:$0xff] %v577_v10  ;;  %s1242_s14 = smov (%p590_p11, %s589_s14), 0 }
 0x17b   : >> { %580 = vst [vmem:[%s986_s21 + $0x18] sm:$0xff] %v579_v11  ;;  %s797_s15 = sshll.u32 %s1242_s14, 6  ;;  %s1235_s29 = smov %s1242_s14 }
 0x17c   : >> { %582 = vst [vmem:[%s986_s21 + $0x20] sm:$0xff] %v581_v12  ;;  %s594_s26 = scalar_lea.vmem %s1146_s6, %s797_s15 [#allocation2]   ;;  %s595_s16 = scalar_lea.vmem %s1171_s10, %s797_s15  }
 0x17d   : >> { %584 = vst [vmem:[%s986_s21 + $0x28] sm:$0xff] %v583_v13  ;;  %569 = sbr.rel (!%p566_p12) target bundleno = 375 (0x177), region = 130 }
 0x17e   : >> { %586 = vst [vmem:[%s986_s21 + $0x30] sm:$0xff] %v585_v14 }
 0x17f   : >> { %588 = vst [vmem:[%s986_s21 + $0x38] sm:$0xff] %v587_v15  ;;  %s1234_s21 = smov %s595_s16 }
 0x182 PF: > { %s1207_s17 = sand.u32 7, %s1240_s18   ;;  %s822_s20 = sshll.u32 %s1177_s12, 6 }
 0x183   : > { %s600_s23 = scalar_lea.vmem %s1146_s6, %s822_s20 [#allocation2]   ;;  %s602_s24 = scalar_lea.vmem %s1171_s10, %s822_s20  }
 0x184   : > { %p802_p13 = scmp.le.s32.totalorder %s1207_s17, 0 }
 0x185   : > { %s1000_s27 = smov (!%p802_p13), %s602_s24   ;;  %s1004_s28 = smov (!%p802_p13), %s600_s23  }
 0x186   : > { %693 = sbr.rel (%p802_p13) target bundleno = 403 (0x193), region = 135  ;;  %s1008_s30 = smov (!%p802_p13), 0  }
 0x187   : > { %s1012_s7 = smov (!%p802_p13), 0  }
 0x18b LB: >> { %v612_v16 = vld [vmem:[%s1006_s28] sm:$0xff]  ;;  %s614_s18 = sadd.s32 1, %s1010_s30  ;;  %s606_s7 = sadd.s32 1, %s1014_s7   ;;  %s1014_s7 = sphi %s1012_s7, %s606_s7   ;;  %s1010_s30 = sphi %s1008_s30, %s1009_s30   ;;  %s1006_s28 = sphi %s1004_s28, %s619_s28   ;;  %s1002_s27 = sphi %s1000_s27, %s620_s27  }
 0x18c   : >> { %613 = vst [vmem:[%s1002_s27] sm:$0xff] %v612_v16  ;;  %p615_p0 = scmp.ge.s32.totalorder %s614_s18, %s1207_s17  ;;  %p605_p1 = scmp.ge.s32.totalorder %s606_s7, %s1207_s17 }
 0x18e   : >> { %s1244_s18 = smov (%p615_p0, %s614_s18), 0  ;;  %608 = sbr.rel (!%p605_p1) target bundleno = 395 (0x18b), region = 141 }
 0x18f   : >> { %s803_s6 = sshll.u32 %s1244_s18, 3  ;;  %s1009_s30 = smov %s1244_s18  }
 0x190   : >> { %s619_s28 = scalar_lea.vmem %s600_s23, %s803_s6 [#allocation2]   ;;  %s620_s27 = scalar_lea.vmem %s602_s24, %s803_s6  }
 0x193 PF: > { %p12_p2 = scmp.ge.s32.totalorder %s1061_s22, 6   ;;  %s1236_s18 = smov %s978_s19 }
 0x194   : > { %s1237_s19 = smov %s1069_s25  ;;  %s1238_s20 = smov %s1061_s22 }
 0x195   :  { %14 = sbr.rel (!%p12_p2) target bundleno = 2 (0x2), region = 152 }

</bundles_post_ra>
